<compile_context>
chip_gen: v5e
topology: v5e:2x2
jax: 0.10.0
libtpu: 0.0.40
codegen_flags: <defaults>
</compile_context>

<pallas_src>
import functools

import jax
import jax.numpy as jnp
from jax import lax
from jax.experimental import pallas as pl
from jax.experimental.pallas import tpu as pltpu

CHANS_IN = 2
CHANS_OUT = 3
KSIZE = 3
PAD = 1
NEG_SLOPE = 0.01  # nn.LeakyReLU() default negative_slope


def conv_lrelu_kernel(w_ref, b_ref, x_ref, o_ref, *, NB, H, W, pad_lanes):
    # w_ref: SMEM (Cout*Cin*K*K,)   f32  flat OIHW weights
    # b_ref: SMEM (Cout,)           f32
    # x_ref: VMEM (NB, Cin, H*W)    f32  lane-dense input chunk
    # o_ref: VMEM (NB, Cout, H*W)   f32  lane-dense output chunk
    HW = H * W

    # Output-column index of every flattened position -> masks for the
    # horizontal (dw = +/-1) taps.  The vertical / out-of-image boundary is
    # handled by the zero extension below, so no row mask is needed.
    lane = lax.broadcasted_iota(jnp.int32, (NB, HW), 1)
    if (W & (W - 1)) == 0:                      # power-of-two width: bit ops
        col = lane & (W - 1)
    else:
        col = lane % W
    keep_l = col >= 1                           # tap dw = -1 valid here
    keep_r = col <= (W - 2)                     # tap dw = +1 valid here

    zeros_pad = jnp.zeros((NB, pad_lanes), dtype=jnp.float32)

    # One accumulator per output channel, seeded with the bias.  `co` is the
    # innermost loop so each shifted window is reused for all output channels.
    accs = [jnp.full((NB, HW), b_ref[co], dtype=jnp.float32)
            for co in range(CHANS_OUT)]

    x = x_ref[...]                              # (NB, Cin, HW), loaded once

    for ci in range(CHANS_IN):
        # Zero-extended flat plane; all concat offsets are multiples of 128
        # lanes, so this is a cheap aligned full-vreg concatenation (no scratch
        # buffer, no padded HBM copy, no store->load round-trip).
        xz = jnp.concatenate([zeros_pad, x[:, ci, :], zeros_pad], axis=-1)
        for kh in range(KSIZE):
            dh = kh - PAD
            for kw in range(KSIZE):
                dw = kw - PAD
                # Shift by (dh, dw) in the flattened row-major domain.
                start = pad_lanes + dh * W + dw
                win = xz[:, start:start + HW]
                if dw == -1:
                    win = jnp.where(keep_l, win, 0.0)
                elif dw == 1:
                    win = jnp.where(keep_r, win, 0.0)
                for co in range(CHANS_OUT):
                    wgt = w_ref[((co * CHANS_IN + ci) * KSIZE + kh) * KSIZE + kw]
                    accs[co] = accs[co] + wgt * win

    # LeakyReLU + one lane-dense (unmasked, full 256-lane) store per channel.
    for co in range(CHANS_OUT):
        a = accs[co]
        o_ref[:, co, :] = jnp.where(a >= 0.0, a, NEG_SLOPE * a)


def conv2d_leaky_relu(x, weights, bias):
    """x: (N, Cin, H, W) f32; weights: (Cout, Cin, K, K) f32; bias: (Cout,) f32."""
    N, Cin, H, W = x.shape
    assert Cin == CHANS_IN
    HW = H * W

    w_flat = weights.reshape(-1).astype(jnp.float32)
    b = bias.astype(jnp.float32)
    # Lane-dense input slab (metadata-only reshape for contiguous NCHW).
    x_flat = x.reshape(N, CHANS_IN, HW).astype(jnp.float32)

    halo = PAD * W + PAD                        # max |flat shift| of a 3x3 tap
    pad_lanes = ((halo + 127) // 128) * 128     # round up -> aligned concats

    # Batch-chunked grid: one chunk of up to 8 images per step (whole batch if
    # it is small or does not divide evenly).  At N=2 this is a single step.
    nb = N if (N <= 8 or N % 8 != 0) else 8
    grid = (N // nb,)

    kern = functools.partial(conv_lrelu_kernel, NB=nb, H=H, W=W,
                             pad_lanes=pad_lanes)
    out_flat = pl.pallas_call(
        kern,
        out_shape=jax.ShapeDtypeStruct((N, CHANS_OUT, HW), jnp.float32),
        grid=grid,
        in_specs=[
            pl.BlockSpec(memory_space=pltpu.MemorySpace.SMEM),   # flat weights
            pl.BlockSpec(memory_space=pltpu.MemorySpace.SMEM),   # bias
            pl.BlockSpec((nb, CHANS_IN, HW), lambda i: (i, 0, 0)),
        ],
        out_specs=pl.BlockSpec((nb, CHANS_OUT, HW), lambda i: (i, 0, 0)),
        compiler_params=pltpu.CompilerParams(
            # Batch chunks are independent -> shard across v7x's 2 TensorCores
            # (no effect on v5e/v6e, which have a single TC per chip).
            dimension_semantics=("parallel",)),
    )(w_flat, b, x_flat)

    # Metadata-only reshape back to NCHW.
    return out_flat.reshape(N, CHANS_OUT, H, W)


def reference(x, weights, bias):
    y = lax.conv_general_dilated(
        x, weights,
        window_strides=(1, 1),
        padding=((PAD, PAD), (PAD, PAD)),
        dimension_numbers=("NCHW", "OIHW", "NCHW"),
    ) + bias.reshape(1, -1, 1, 1)
    return jnp.where(y >= 0.0, y, NEG_SLOPE * y)


if __name__ == "__main__":
    key = jax.random.PRNGKey(0)
    kx, kparam = jax.random.split(key)

    # Module init: weights ~ uniform [0, 1) (np.random.rand), bias = 0.
    weights = jax.random.uniform(
        kparam, (CHANS_OUT, CHANS_IN, KSIZE, KSIZE), dtype=jnp.float32)
    bias = jnp.zeros((CHANS_OUT,), dtype=jnp.float32)

    # Small input consistent with the module: batch=2, chans_in=2, 16x16 spatial.
    x = jax.random.normal(kx, (2, CHANS_IN, 16, 16), dtype=jnp.float32)

    out = jax.block_until_ready(conv2d_leaky_relu(x, weights, bias))
    ref = jax.block_until_ready(reference(x, weights, bias))

    assert out.shape == (2, CHANS_OUT, 16, 16)
    assert jnp.allclose(out, ref, atol=1e-5, rtol=1e-5), "mismatch vs reference"

    print("KERNEL_OK")
</pallas_src>

<mosaic_0001>
module attributes {stable_mosaic.version = 11 : i64} {
  func.func @conv_lrelu_kernel(%arg0: i32, %arg1: memref<54xf32, #tpu.memory_space<smem>>, %arg2: memref<3xf32, #tpu.memory_space<smem>>, %arg3: memref<2x2x256xf32, #tpu.memory_space<vmem>>, %arg4: memref<2x3x256xf32, #tpu.memory_space<vmem>>) attributes {dimension_semantics = [#tpu.dimension_semantics<parallel>], iteration_bounds = array<i64: 1>, scalar_prefetch = 0 : i64, scratch_operands = 0 : i64, tpu.core_type = #tpu.core_type<tc>, window_params = [{transform_indices = @transform_0, window_bounds = array<i64: 54>}, {transform_indices = @transform_1, window_bounds = array<i64: 3>}, {transform_indices = @transform_2, window_bounds = array<i64: 2, 2, 256>}, {transform_indices = @transform_3, window_bounds = array<i64: 2, 3, 256>}]} {
    %0 = tpu.iota {dimensions = array<i32: 1>} : vector<2x256xi32>
    %c15_i32 = arith.constant 15 : i32
    %1 = vector.broadcast %c15_i32 : i32 to vector<2x256xi32>
    %2 = arith.andi %0, %1 : vector<2x256xi32>
    %c1_i32 = arith.constant 1 : i32
    %3 = vector.broadcast %c1_i32 : i32 to vector<2x256xi32>
    %4 = arith.cmpi sge, %2, %3 : vector<2x256xi32>
    %c14_i32 = arith.constant 14 : i32
    %5 = vector.broadcast %c14_i32 : i32 to vector<2x256xi32>
    %6 = arith.cmpi sle, %2, %5 : vector<2x256xi32>
    %cst = arith.constant 0.000000e+00 : f32
    %7 = vector.broadcast %cst : f32 to vector<2x128xf32>
    %c0 = arith.constant 0 : index
    %8 = memref.load %arg2[%c0] : memref<3xf32, #tpu.memory_space<smem>>
    %9 = vector.broadcast %8 : f32 to vector<2x256xf32>
    %c1 = arith.constant 1 : index
    %10 = memref.load %arg2[%c1] : memref<3xf32, #tpu.memory_space<smem>>
    %11 = vector.broadcast %10 : f32 to vector<2x256xf32>
    %c2 = arith.constant 2 : index
    %12 = memref.load %arg2[%c2] : memref<3xf32, #tpu.memory_space<smem>>
    %13 = vector.broadcast %12 : f32 to vector<2x256xf32>
    %c0_0 = arith.constant 0 : index
    %c0_1 = arith.constant 0 : index
    %c0_2 = arith.constant 0 : index
    %14 = vector.load %arg3[%c0_0, %c0_1, %c0_2] : memref<2x2x256xf32, #tpu.memory_space<vmem>>, vector<2x2x256xf32>
    %15 = vector.extract_strided_slice %14 {offsets = [0, 0, 0], sizes = [2, 1, 256], strides = [1, 1, 1]} : vector<2x2x256xf32> to vector<2x1x256xf32>
    %16 = vector.shape_cast %15 : vector<2x1x256xf32> to vector<2x256xf32>
    %17 = tpu.concatenate %7, %16, %7 in 1 : vector<2x128xf32>, vector<2x256xf32>, vector<2x128xf32> -> vector<2x512xf32>
    %18 = vector.extract_strided_slice %17 {offsets = [0, 111], sizes = [2, 256], strides = [1, 1]} : vector<2x512xf32> to vector<2x256xf32>
    %cst_3 = arith.constant 0.000000e+00 : f32
    %19 = vector.broadcast %cst_3 : f32 to vector<2x256xf32>
    %20 = arith.select %4, %18, %19 : vector<2x256xi1>, vector<2x256xf32>
    %c0_4 = arith.constant 0 : index
    %21 = memref.load %arg1[%c0_4] : memref<54xf32, #tpu.memory_space<smem>>
    %22 = vector.broadcast %21 : f32 to vector<2x256xf32>
    %23 = arith.mulf %22, %20 : vector<2x256xf32>
    %24 = arith.addf %9, %23 : vector<2x256xf32>
    %c18 = arith.constant 18 : index
    %25 = memref.load %arg1[%c18] : memref<54xf32, #tpu.memory_space<smem>>
    %26 = vector.broadcast %25 : f32 to vector<2x256xf32>
    %27 = arith.mulf %26, %20 : vector<2x256xf32>
    %28 = arith.addf %11, %27 : vector<2x256xf32>
    %c36 = arith.constant 36 : index
    %29 = memref.load %arg1[%c36] : memref<54xf32, #tpu.memory_space<smem>>
    %30 = vector.broadcast %29 : f32 to vector<2x256xf32>
    %31 = arith.mulf %30, %20 : vector<2x256xf32>
    %32 = arith.addf %13, %31 : vector<2x256xf32>
    %33 = vector.extract_strided_slice %17 {offsets = [0, 112], sizes = [2, 256], strides = [1, 1]} : vector<2x512xf32> to vector<2x256xf32>
    %c1_5 = arith.constant 1 : index
    %34 = memref.load %arg1[%c1_5] : memref<54xf32, #tpu.memory_space<smem>>
    %35 = vector.broadcast %34 : f32 to vector<2x256xf32>
    %36 = arith.mulf %35, %33 : vector<2x256xf32>
    %37 = arith.addf %24, %36 : vector<2x256xf32>
    %c19 = arith.constant 19 : index
    %38 = memref.load %arg1[%c19] : memref<54xf32, #tpu.memory_space<smem>>
    %39 = vector.broadcast %38 : f32 to vector<2x256xf32>
    %40 = arith.mulf %39, %33 : vector<2x256xf32>
    %41 = arith.addf %28, %40 : vector<2x256xf32>
    %c37 = arith.constant 37 : index
    %42 = memref.load %arg1[%c37] : memref<54xf32, #tpu.memory_space<smem>>
    %43 = vector.broadcast %42 : f32 to vector<2x256xf32>
    %44 = arith.mulf %43, %33 : vector<2x256xf32>
    %45 = arith.addf %32, %44 : vector<2x256xf32>
    %46 = vector.extract_strided_slice %17 {offsets = [0, 113], sizes = [2, 256], strides = [1, 1]} : vector<2x512xf32> to vector<2x256xf32>
    %cst_6 = arith.constant 0.000000e+00 : f32
    %47 = vector.broadcast %cst_6 : f32 to vector<2x256xf32>
    %48 = arith.select %6, %46, %47 : vector<2x256xi1>, vector<2x256xf32>
    %c2_7 = arith.constant 2 : index
    %49 = memref.load %arg1[%c2_7] : memref<54xf32, #tpu.memory_space<smem>>
    %50 = vector.broadcast %49 : f32 to vector<2x256xf32>
    %51 = arith.mulf %50, %48 : vector<2x256xf32>
    %52 = arith.addf %37, %51 : vector<2x256xf32>
    %c20 = arith.constant 20 : index
    %53 = memref.load %arg1[%c20] : memref<54xf32, #tpu.memory_space<smem>>
    %54 = vector.broadcast %53 : f32 to vector<2x256xf32>
    %55 = arith.mulf %54, %48 : vector<2x256xf32>
    %56 = arith.addf %41, %55 : vector<2x256xf32>
    %c38 = arith.constant 38 : index
    %57 = memref.load %arg1[%c38] : memref<54xf32, #tpu.memory_space<smem>>
    %58 = vector.broadcast %57 : f32 to vector<2x256xf32>
    %59 = arith.mulf %58, %48 : vector<2x256xf32>
    %60 = arith.addf %45, %59 : vector<2x256xf32>
    %61 = vector.extract_strided_slice %17 {offsets = [0, 127], sizes = [2, 256], strides = [1, 1]} : vector<2x512xf32> to vector<2x256xf32>
    %cst_8 = arith.constant 0.000000e+00 : f32
    %62 = vector.broadcast %cst_8 : f32 to vector<2x256xf32>
    %63 = arith.select %4, %61, %62 : vector<2x256xi1>, vector<2x256xf32>
    %c3 = arith.constant 3 : index
    %64 = memref.load %arg1[%c3] : memref<54xf32, #tpu.memory_space<smem>>
    %65 = vector.broadcast %64 : f32 to vector<2x256xf32>
    %66 = arith.mulf %65, %63 : vector<2x256xf32>
    %67 = arith.addf %52, %66 : vector<2x256xf32>
    %c21 = arith.constant 21 : index
    %68 = memref.load %arg1[%c21] : memref<54xf32, #tpu.memory_space<smem>>
    %69 = vector.broadcast %68 : f32 to vector<2x256xf32>
    %70 = arith.mulf %69, %63 : vector<2x256xf32>
    %71 = arith.addf %56, %70 : vector<2x256xf32>
    %c39 = arith.constant 39 : index
    %72 = memref.load %arg1[%c39] : memref<54xf32, #tpu.memory_space<smem>>
    %73 = vector.broadcast %72 : f32 to vector<2x256xf32>
    %74 = arith.mulf %73, %63 : vector<2x256xf32>
    %75 = arith.addf %60, %74 : vector<2x256xf32>
    %76 = vector.extract_strided_slice %17 {offsets = [0, 128], sizes = [2, 256], strides = [1, 1]} : vector<2x512xf32> to vector<2x256xf32>
    %c4 = arith.constant 4 : index
    %77 = memref.load %arg1[%c4] : memref<54xf32, #tpu.memory_space<smem>>
    %78 = vector.broadcast %77 : f32 to vector<2x256xf32>
    %79 = arith.mulf %78, %76 : vector<2x256xf32>
    %80 = arith.addf %67, %79 : vector<2x256xf32>
    %c22 = arith.constant 22 : index
    %81 = memref.load %arg1[%c22] : memref<54xf32, #tpu.memory_space<smem>>
    %82 = vector.broadcast %81 : f32 to vector<2x256xf32>
    %83 = arith.mulf %82, %76 : vector<2x256xf32>
    %84 = arith.addf %71, %83 : vector<2x256xf32>
    %c40 = arith.constant 40 : index
    %85 = memref.load %arg1[%c40] : memref<54xf32, #tpu.memory_space<smem>>
    %86 = vector.broadcast %85 : f32 to vector<2x256xf32>
    %87 = arith.mulf %86, %76 : vector<2x256xf32>
    %88 = arith.addf %75, %87 : vector<2x256xf32>
    %89 = vector.extract_strided_slice %17 {offsets = [0, 129], sizes = [2, 256], strides = [1, 1]} : vector<2x512xf32> to vector<2x256xf32>
    %cst_9 = arith.constant 0.000000e+00 : f32
    %90 = vector.broadcast %cst_9 : f32 to vector<2x256xf32>
    %91 = arith.select %6, %89, %90 : vector<2x256xi1>, vector<2x256xf32>
    %c5 = arith.constant 5 : index
    %92 = memref.load %arg1[%c5] : memref<54xf32, #tpu.memory_space<smem>>
    %93 = vector.broadcast %92 : f32 to vector<2x256xf32>
    %94 = arith.mulf %93, %91 : vector<2x256xf32>
    %95 = arith.addf %80, %94 : vector<2x256xf32>
    %c23 = arith.constant 23 : index
    %96 = memref.load %arg1[%c23] : memref<54xf32, #tpu.memory_space<smem>>
    %97 = vector.broadcast %96 : f32 to vector<2x256xf32>
    %98 = arith.mulf %97, %91 : vector<2x256xf32>
    %99 = arith.addf %84, %98 : vector<2x256xf32>
    %c41 = arith.constant 41 : index
    %100 = memref.load %arg1[%c41] : memref<54xf32, #tpu.memory_space<smem>>
    %101 = vector.broadcast %100 : f32 to vector<2x256xf32>
    %102 = arith.mulf %101, %91 : vector<2x256xf32>
    %103 = arith.addf %88, %102 : vector<2x256xf32>
    %104 = vector.extract_strided_slice %17 {offsets = [0, 143], sizes = [2, 256], strides = [1, 1]} : vector<2x512xf32> to vector<2x256xf32>
    %cst_10 = arith.constant 0.000000e+00 : f32
    %105 = vector.broadcast %cst_10 : f32 to vector<2x256xf32>
    %106 = arith.select %4, %104, %105 : vector<2x256xi1>, vector<2x256xf32>
    %c6 = arith.constant 6 : index
    %107 = memref.load %arg1[%c6] : memref<54xf32, #tpu.memory_space<smem>>
    %108 = vector.broadcast %107 : f32 to vector<2x256xf32>
    %109 = arith.mulf %108, %106 : vector<2x256xf32>
    %110 = arith.addf %95, %109 : vector<2x256xf32>
    %c24 = arith.constant 24 : index
    %111 = memref.load %arg1[%c24] : memref<54xf32, #tpu.memory_space<smem>>
    %112 = vector.broadcast %111 : f32 to vector<2x256xf32>
    %113 = arith.mulf %112, %106 : vector<2x256xf32>
    %114 = arith.addf %99, %113 : vector<2x256xf32>
    %c42 = arith.constant 42 : index
    %115 = memref.load %arg1[%c42] : memref<54xf32, #tpu.memory_space<smem>>
    %116 = vector.broadcast %115 : f32 to vector<2x256xf32>
    %117 = arith.mulf %116, %106 : vector<2x256xf32>
    %118 = arith.addf %103, %117 : vector<2x256xf32>
    %119 = vector.extract_strided_slice %17 {offsets = [0, 144], sizes = [2, 256], strides = [1, 1]} : vector<2x512xf32> to vector<2x256xf32>
    %c7 = arith.constant 7 : index
    %120 = memref.load %arg1[%c7] : memref<54xf32, #tpu.memory_space<smem>>
    %121 = vector.broadcast %120 : f32 to vector<2x256xf32>
    %122 = arith.mulf %121, %119 : vector<2x256xf32>
    %123 = arith.addf %110, %122 : vector<2x256xf32>
    %c25 = arith.constant 25 : index
    %124 = memref.load %arg1[%c25] : memref<54xf32, #tpu.memory_space<smem>>
    %125 = vector.broadcast %124 : f32 to vector<2x256xf32>
    %126 = arith.mulf %125, %119 : vector<2x256xf32>
    %127 = arith.addf %114, %126 : vector<2x256xf32>
    %c43 = arith.constant 43 : index
    %128 = memref.load %arg1[%c43] : memref<54xf32, #tpu.memory_space<smem>>
    %129 = vector.broadcast %128 : f32 to vector<2x256xf32>
    %130 = arith.mulf %129, %119 : vector<2x256xf32>
    %131 = arith.addf %118, %130 : vector<2x256xf32>
    %132 = vector.extract_strided_slice %17 {offsets = [0, 145], sizes = [2, 256], strides = [1, 1]} : vector<2x512xf32> to vector<2x256xf32>
    %cst_11 = arith.constant 0.000000e+00 : f32
    %133 = vector.broadcast %cst_11 : f32 to vector<2x256xf32>
    %134 = arith.select %6, %132, %133 : vector<2x256xi1>, vector<2x256xf32>
    %c8 = arith.constant 8 : index
    %135 = memref.load %arg1[%c8] : memref<54xf32, #tpu.memory_space<smem>>
    %136 = vector.broadcast %135 : f32 to vector<2x256xf32>
    %137 = arith.mulf %136, %134 : vector<2x256xf32>
    %138 = arith.addf %123, %137 : vector<2x256xf32>
    %c26 = arith.constant 26 : index
    %139 = memref.load %arg1[%c26] : memref<54xf32, #tpu.memory_space<smem>>
    %140 = vector.broadcast %139 : f32 to vector<2x256xf32>
    %141 = arith.mulf %140, %134 : vector<2x256xf32>
    %142 = arith.addf %127, %141 : vector<2x256xf32>
    %c44 = arith.constant 44 : index
    %143 = memref.load %arg1[%c44] : memref<54xf32, #tpu.memory_space<smem>>
    %144 = vector.broadcast %143 : f32 to vector<2x256xf32>
    %145 = arith.mulf %144, %134 : vector<2x256xf32>
    %146 = arith.addf %131, %145 : vector<2x256xf32>
    %147 = vector.extract_strided_slice %14 {offsets = [0, 1, 0], sizes = [2, 1, 256], strides = [1, 1, 1]} : vector<2x2x256xf32> to vector<2x1x256xf32>
    %148 = vector.shape_cast %147 : vector<2x1x256xf32> to vector<2x256xf32>
    %149 = tpu.concatenate %7, %148, %7 in 1 : vector<2x128xf32>, vector<2x256xf32>, vector<2x128xf32> -> vector<2x512xf32>
    %150 = vector.extract_strided_slice %149 {offsets = [0, 111], sizes = [2, 256], strides = [1, 1]} : vector<2x512xf32> to vector<2x256xf32>
    %cst_12 = arith.constant 0.000000e+00 : f32
    %151 = vector.broadcast %cst_12 : f32 to vector<2x256xf32>
    %152 = arith.select %4, %150, %151 : vector<2x256xi1>, vector<2x256xf32>
    %c9 = arith.constant 9 : index
    %153 = memref.load %arg1[%c9] : memref<54xf32, #tpu.memory_space<smem>>
    %154 = vector.broadcast %153 : f32 to vector<2x256xf32>
    %155 = arith.mulf %154, %152 : vector<2x256xf32>
    %156 = arith.addf %138, %155 : vector<2x256xf32>
    %c27 = arith.constant 27 : index
    %157 = memref.load %arg1[%c27] : memref<54xf32, #tpu.memory_space<smem>>
    %158 = vector.broadcast %157 : f32 to vector<2x256xf32>
    %159 = arith.mulf %158, %152 : vector<2x256xf32>
    %160 = arith.addf %142, %159 : vector<2x256xf32>
    %c45 = arith.constant 45 : index
    %161 = memref.load %arg1[%c45] : memref<54xf32, #tpu.memory_space<smem>>
    %162 = vector.broadcast %161 : f32 to vector<2x256xf32>
    %163 = arith.mulf %162, %152 : vector<2x256xf32>
    %164 = arith.addf %146, %163 : vector<2x256xf32>
    %165 = vector.extract_strided_slice %149 {offsets = [0, 112], sizes = [2, 256], strides = [1, 1]} : vector<2x512xf32> to vector<2x256xf32>
    %c10 = arith.constant 10 : index
    %166 = memref.load %arg1[%c10] : memref<54xf32, #tpu.memory_space<smem>>
    %167 = vector.broadcast %166 : f32 to vector<2x256xf32>
    %168 = arith.mulf %167, %165 : vector<2x256xf32>
    %169 = arith.addf %156, %168 : vector<2x256xf32>
    %c28 = arith.constant 28 : index
    %170 = memref.load %arg1[%c28] : memref<54xf32, #tpu.memory_space<smem>>
    %171 = vector.broadcast %170 : f32 to vector<2x256xf32>
    %172 = arith.mulf %171, %165 : vector<2x256xf32>
    %173 = arith.addf %160, %172 : vector<2x256xf32>
    %c46 = arith.constant 46 : index
    %174 = memref.load %arg1[%c46] : memref<54xf32, #tpu.memory_space<smem>>
    %175 = vector.broadcast %174 : f32 to vector<2x256xf32>
    %176 = arith.mulf %175, %165 : vector<2x256xf32>
    %177 = arith.addf %164, %176 : vector<2x256xf32>
    %178 = vector.extract_strided_slice %149 {offsets = [0, 113], sizes = [2, 256], strides = [1, 1]} : vector<2x512xf32> to vector<2x256xf32>
    %cst_13 = arith.constant 0.000000e+00 : f32
    %179 = vector.broadcast %cst_13 : f32 to vector<2x256xf32>
    %180 = arith.select %6, %178, %179 : vector<2x256xi1>, vector<2x256xf32>
    %c11 = arith.constant 11 : index
    %181 = memref.load %arg1[%c11] : memref<54xf32, #tpu.memory_space<smem>>
    %182 = vector.broadcast %181 : f32 to vector<2x256xf32>
    %183 = arith.mulf %182, %180 : vector<2x256xf32>
    %184 = arith.addf %169, %183 : vector<2x256xf32>
    %c29 = arith.constant 29 : index
    %185 = memref.load %arg1[%c29] : memref<54xf32, #tpu.memory_space<smem>>
    %186 = vector.broadcast %185 : f32 to vector<2x256xf32>
    %187 = arith.mulf %186, %180 : vector<2x256xf32>
    %188 = arith.addf %173, %187 : vector<2x256xf32>
    %c47 = arith.constant 47 : index
    %189 = memref.load %arg1[%c47] : memref<54xf32, #tpu.memory_space<smem>>
    %190 = vector.broadcast %189 : f32 to vector<2x256xf32>
    %191 = arith.mulf %190, %180 : vector<2x256xf32>
    %192 = arith.addf %177, %191 : vector<2x256xf32>
    %193 = vector.extract_strided_slice %149 {offsets = [0, 127], sizes = [2, 256], strides = [1, 1]} : vector<2x512xf32> to vector<2x256xf32>
    %cst_14 = arith.constant 0.000000e+00 : f32
    %194 = vector.broadcast %cst_14 : f32 to vector<2x256xf32>
    %195 = arith.select %4, %193, %194 : vector<2x256xi1>, vector<2x256xf32>
    %c12 = arith.constant 12 : index
    %196 = memref.load %arg1[%c12] : memref<54xf32, #tpu.memory_space<smem>>
    %197 = vector.broadcast %196 : f32 to vector<2x256xf32>
    %198 = arith.mulf %197, %195 : vector<2x256xf32>
    %199 = arith.addf %184, %198 : vector<2x256xf32>
    %c30 = arith.constant 30 : index
    %200 = memref.load %arg1[%c30] : memref<54xf32, #tpu.memory_space<smem>>
    %201 = vector.broadcast %200 : f32 to vector<2x256xf32>
    %202 = arith.mulf %201, %195 : vector<2x256xf32>
    %203 = arith.addf %188, %202 : vector<2x256xf32>
    %c48 = arith.constant 48 : index
    %204 = memref.load %arg1[%c48] : memref<54xf32, #tpu.memory_space<smem>>
    %205 = vector.broadcast %204 : f32 to vector<2x256xf32>
    %206 = arith.mulf %205, %195 : vector<2x256xf32>
    %207 = arith.addf %192, %206 : vector<2x256xf32>
    %208 = vector.extract_strided_slice %149 {offsets = [0, 128], sizes = [2, 256], strides = [1, 1]} : vector<2x512xf32> to vector<2x256xf32>
    %c13 = arith.constant 13 : index
    %209 = memref.load %arg1[%c13] : memref<54xf32, #tpu.memory_space<smem>>
    %210 = vector.broadcast %209 : f32 to vector<2x256xf32>
    %211 = arith.mulf %210, %208 : vector<2x256xf32>
    %212 = arith.addf %199, %211 : vector<2x256xf32>
    %c31 = arith.constant 31 : index
    %213 = memref.load %arg1[%c31] : memref<54xf32, #tpu.memory_space<smem>>
    %214 = vector.broadcast %213 : f32 to vector<2x256xf32>
    %215 = arith.mulf %214, %208 : vector<2x256xf32>
    %216 = arith.addf %203, %215 : vector<2x256xf32>
    %c49 = arith.constant 49 : index
    %217 = memref.load %arg1[%c49] : memref<54xf32, #tpu.memory_space<smem>>
    %218 = vector.broadcast %217 : f32 to vector<2x256xf32>
    %219 = arith.mulf %218, %208 : vector<2x256xf32>
    %220 = arith.addf %207, %219 : vector<2x256xf32>
    %221 = vector.extract_strided_slice %149 {offsets = [0, 129], sizes = [2, 256], strides = [1, 1]} : vector<2x512xf32> to vector<2x256xf32>
    %cst_15 = arith.constant 0.000000e+00 : f32
    %222 = vector.broadcast %cst_15 : f32 to vector<2x256xf32>
    %223 = arith.select %6, %221, %222 : vector<2x256xi1>, vector<2x256xf32>
    %c14 = arith.constant 14 : index
    %224 = memref.load %arg1[%c14] : memref<54xf32, #tpu.memory_space<smem>>
    %225 = vector.broadcast %224 : f32 to vector<2x256xf32>
    %226 = arith.mulf %225, %223 : vector<2x256xf32>
    %227 = arith.addf %212, %226 : vector<2x256xf32>
    %c32 = arith.constant 32 : index
    %228 = memref.load %arg1[%c32] : memref<54xf32, #tpu.memory_space<smem>>
    %229 = vector.broadcast %228 : f32 to vector<2x256xf32>
    %230 = arith.mulf %229, %223 : vector<2x256xf32>
    %231 = arith.addf %216, %230 : vector<2x256xf32>
    %c50 = arith.constant 50 : index
    %232 = memref.load %arg1[%c50] : memref<54xf32, #tpu.memory_space<smem>>
    %233 = vector.broadcast %232 : f32 to vector<2x256xf32>
    %234 = arith.mulf %233, %223 : vector<2x256xf32>
    %235 = arith.addf %220, %234 : vector<2x256xf32>
    %236 = vector.extract_strided_slice %149 {offsets = [0, 143], sizes = [2, 256], strides = [1, 1]} : vector<2x512xf32> to vector<2x256xf32>
    %cst_16 = arith.constant 0.000000e+00 : f32
    %237 = vector.broadcast %cst_16 : f32 to vector<2x256xf32>
    %238 = arith.select %4, %236, %237 : vector<2x256xi1>, vector<2x256xf32>
    %c15 = arith.constant 15 : index
    %239 = memref.load %arg1[%c15] : memref<54xf32, #tpu.memory_space<smem>>
    %240 = vector.broadcast %239 : f32 to vector<2x256xf32>
    %241 = arith.mulf %240, %238 : vector<2x256xf32>
    %242 = arith.addf %227, %241 : vector<2x256xf32>
    %c33 = arith.constant 33 : index
    %243 = memref.load %arg1[%c33] : memref<54xf32, #tpu.memory_space<smem>>
    %244 = vector.broadcast %243 : f32 to vector<2x256xf32>
    %245 = arith.mulf %244, %238 : vector<2x256xf32>
    %246 = arith.addf %231, %245 : vector<2x256xf32>
    %c51 = arith.constant 51 : index
    %247 = memref.load %arg1[%c51] : memref<54xf32, #tpu.memory_space<smem>>
    %248 = vector.broadcast %247 : f32 to vector<2x256xf32>
    %249 = arith.mulf %248, %238 : vector<2x256xf32>
    %250 = arith.addf %235, %249 : vector<2x256xf32>
    %251 = vector.extract_strided_slice %149 {offsets = [0, 144], sizes = [2, 256], strides = [1, 1]} : vector<2x512xf32> to vector<2x256xf32>
    %c16 = arith.constant 16 : index
    %252 = memref.load %arg1[%c16] : memref<54xf32, #tpu.memory_space<smem>>
    %253 = vector.broadcast %252 : f32 to vector<2x256xf32>
    %254 = arith.mulf %253, %251 : vector<2x256xf32>
    %255 = arith.addf %242, %254 : vector<2x256xf32>
    %c34 = arith.constant 34 : index
    %256 = memref.load %arg1[%c34] : memref<54xf32, #tpu.memory_space<smem>>
    %257 = vector.broadcast %256 : f32 to vector<2x256xf32>
    %258 = arith.mulf %257, %251 : vector<2x256xf32>
    %259 = arith.addf %246, %258 : vector<2x256xf32>
    %c52 = arith.constant 52 : index
    %260 = memref.load %arg1[%c52] : memref<54xf32, #tpu.memory_space<smem>>
    %261 = vector.broadcast %260 : f32 to vector<2x256xf32>
    %262 = arith.mulf %261, %251 : vector<2x256xf32>
    %263 = arith.addf %250, %262 : vector<2x256xf32>
    %264 = vector.extract_strided_slice %149 {offsets = [0, 145], sizes = [2, 256], strides = [1, 1]} : vector<2x512xf32> to vector<2x256xf32>
    %cst_17 = arith.constant 0.000000e+00 : f32
    %265 = vector.broadcast %cst_17 : f32 to vector<2x256xf32>
    %266 = arith.select %6, %264, %265 : vector<2x256xi1>, vector<2x256xf32>
    %c17 = arith.constant 17 : index
    %267 = memref.load %arg1[%c17] : memref<54xf32, #tpu.memory_space<smem>>
    %268 = vector.broadcast %267 : f32 to vector<2x256xf32>
    %269 = arith.mulf %268, %266 : vector<2x256xf32>
    %270 = arith.addf %255, %269 : vector<2x256xf32>
    %c35 = arith.constant 35 : index
    %271 = memref.load %arg1[%c35] : memref<54xf32, #tpu.memory_space<smem>>
    %272 = vector.broadcast %271 : f32 to vector<2x256xf32>
    %273 = arith.mulf %272, %266 : vector<2x256xf32>
    %274 = arith.addf %259, %273 : vector<2x256xf32>
    %c53 = arith.constant 53 : index
    %275 = memref.load %arg1[%c53] : memref<54xf32, #tpu.memory_space<smem>>
    %276 = vector.broadcast %275 : f32 to vector<2x256xf32>
    %277 = arith.mulf %276, %266 : vector<2x256xf32>
    %278 = arith.addf %263, %277 : vector<2x256xf32>
    %cst_18 = arith.constant 0.000000e+00 : f32
    %279 = vector.broadcast %cst_18 : f32 to vector<2x256xf32>
    %280 = arith.cmpf oge, %270, %279 : vector<2x256xf32>
    %cst_19 = arith.constant 0.00999999977 : f32
    %281 = vector.broadcast %cst_19 : f32 to vector<2x256xf32>
    %282 = arith.mulf %281, %270 : vector<2x256xf32>
    %283 = arith.select %280, %270, %282 : vector<2x256xi1>, vector<2x256xf32>
    %c0_20 = arith.constant 0 : index
    %c0_21 = arith.constant 0 : index
    %c0_22 = arith.constant 0 : index
    %284 = vector.load %arg4[%c0_20, %c0_21, %c0_22] : memref<2x3x256xf32, #tpu.memory_space<vmem>>, vector<2x1x256xf32>
    %285 = vector.shape_cast %284 : vector<2x1x256xf32> to vector<2x256xf32>
    %286 = vector.shape_cast %283 : vector<2x256xf32> to vector<2x1x256xf32>
    tpu.vector_store %arg4[%c0_20, %c0_21, %c0_22], %286 {strides = array<i32>} : memref<2x3x256xf32, #tpu.memory_space<vmem>>, vector<2x1x256xf32>,
    %cst_23 = arith.constant 0.000000e+00 : f32
    %287 = vector.broadcast %cst_23 : f32 to vector<2x256xf32>
    %288 = arith.cmpf oge, %274, %287 : vector<2x256xf32>
    %cst_24 = arith.constant 0.00999999977 : f32
    %289 = vector.broadcast %cst_24 : f32 to vector<2x256xf32>
    %290 = arith.mulf %289, %274 : vector<2x256xf32>
    %291 = arith.select %288, %274, %290 : vector<2x256xi1>, vector<2x256xf32>
    %c0_25 = arith.constant 0 : index
    %c1_26 = arith.constant 1 : index
    %c0_27 = arith.constant 0 : index
    %292 = vector.load %arg4[%c0_25, %c1_26, %c0_27] : memref<2x3x256xf32, #tpu.memory_space<vmem>>, vector<2x1x256xf32>
    %293 = vector.shape_cast %292 : vector<2x1x256xf32> to vector<2x256xf32>
    %294 = vector.shape_cast %291 : vector<2x256xf32> to vector<2x1x256xf32>
    tpu.vector_store %arg4[%c0_25, %c1_26, %c0_27], %294 {strides = array<i32>} : memref<2x3x256xf32, #tpu.memory_space<vmem>>, vector<2x1x256xf32>,
    %cst_28 = arith.constant 0.000000e+00 : f32
    %295 = vector.broadcast %cst_28 : f32 to vector<2x256xf32>
    %296 = arith.cmpf oge, %278, %295 : vector<2x256xf32>
    %cst_29 = arith.constant 0.00999999977 : f32
    %297 = vector.broadcast %cst_29 : f32 to vector<2x256xf32>
    %298 = arith.mulf %297, %278 : vector<2x256xf32>
    %299 = arith.select %296, %278, %298 : vector<2x256xi1>, vector<2x256xf32>
    %c0_30 = arith.constant 0 : index
    %c2_31 = arith.constant 2 : index
    %c0_32 = arith.constant 0 : index
    %300 = vector.load %arg4[%c0_30, %c2_31, %c0_32] : memref<2x3x256xf32, #tpu.memory_space<vmem>>, vector<2x1x256xf32>
    %301 = vector.shape_cast %300 : vector<2x1x256xf32> to vector<2x256xf32>
    %302 = vector.shape_cast %299 : vector<2x256xf32> to vector<2x1x256xf32>
    tpu.vector_store %arg4[%c0_30, %c2_31, %c0_32], %302 {strides = array<i32>} : memref<2x3x256xf32, #tpu.memory_space<vmem>>, vector<2x1x256xf32>,
    return
  }
  func.func @transform_0(%arg0: i32) -> i32 {
    %c0_i32 = arith.constant 0 : i32
    %c0_i32_0 = arith.constant 0 : i32
    return %c0_i32 : i32
  }
  func.func @transform_1(%arg0: i32) -> i32 {
    %c0_i32 = arith.constant 0 : i32
    %c0_i32_0 = arith.constant 0 : i32
    return %c0_i32 : i32
  }
  func.func @transform_2(%arg0: i32) -> (i32, i32, i32) {
    %c0_i32 = arith.constant 0 : i32
    %c0_i32_0 = arith.constant 0 : i32
    %c0_i32_1 = arith.constant 0 : i32
    return %arg0, %c0_i32, %c0_i32_0 : i32, i32, i32
  }
  func.func @transform_3(%arg0: i32) -> (i32, i32, i32) {
    %c0_i32 = arith.constant 0 : i32
    %c0_i32_0 = arith.constant 0 : i32
    %c0_i32_1 = arith.constant 0 : i32
    return %arg0, %c0_i32, %c0_i32_0 : i32, i32, i32
  }
}

</mosaic_0001>

<bundles_post_ra>
// kernel: tpu_custom_call.1
= control target key start
LH: loop header
LB: loop body
LE: loop exit
PB: predicated region body
PF: predicated region fallthrough
CT: control target
= control target key end

     0   :  { %8 = vsyncpa [#allocation4], 0  ;;  %s1576_s0 = inlined_call_operand.hbm [shape: f32[54], index: 0, kind: input, shape index: {}]   ;;  %s1577_s1 = inlined_call_operand.hbm [shape: f32[3], index: 1, kind: input, shape index: {}]   ;;  %s1578_s2 = inlined_call_operand.hbm [shape: f32[2,2,256], index: 2, kind: input, shape index: {}]   ;;  %s1579_s3 = inlined_call_operand.vmem [shape: f32[2,3,256], index: 3, kind: output, shape index: {}]  }
   0x1   :  { %9 = vsyncpa [#allocation6], 0  ;;  %s16_s14 = sshll.u32 %s1576_s0, 4  ;;  %s17_s14 = int_to_ptr.hbm [resolvable:$true] %s16_s14 }
   0x2   :  { %10 = vsyncpa [#allocation3], 0  ;;  %s25_s17 = sshll.u32 %s1577_s1, 4  ;;  %s917_s18 = smov [#allocation2]   ;;  %s26_s17 = int_to_ptr.hbm [resolvable:$true] %s25_s17 }
   0x3   :  { %19 = dma.hbm_to_smem %s17_s14, 16, %s917_s18, [#allocation4]  }
   0x4   :  { %s918_s19 = smov [#allocation5]   ;;  %s33_s22 = sshll.u32 %s1578_s2, 4  ;;  %s34_s22 = int_to_ptr.hbm [resolvable:$true] %s33_s22 }
   0x5   :  { %28 = dma.hbm_to_smem %s26_s17, 16, %s918_s19, [#allocation6]  }
   0x6   :  { %s919_s23 = smov [#allocation7]   ;;  %s920_s0 = smov 64  }
   0x7   :  { %s35_s24 = sshll.u32 %s919_s23, 4  ;;  %s921_s25 = smov 4   ;;  %s36_s24 = int_to_ptr.vmem [resolvable:$true] %s35_s24 }
   0x8   :  { %41 = dma.hbm_to_vmem [thread:$0]  %s34_s22, 128, %s36_s24, [#allocation3], %s920_s0, %s920_s0, %s921_s25  }
   0x9   :  { %911 = dma.done.wait [#allocation4], 16  }
   0xa   :  { %912 = vsyncadd [#allocation4], 4294967280 }
   0xb   :  { %913 = dma.done.wait [#allocation6], 16  }
   0xc   :  { %914 = vsyncadd [#allocation6], 4294967280 }
   0xd   :  { %915 = dma.done.wait [#allocation3], 128  }
   0xe   :  { %916 = vsyncadd [#allocation3], 4294967168 }
   0xf   :  { %54 = sfence }
  0x10   :  { %v960_v0 = vld [vmem:[#allocation7] sm:$0xf]  ;;  %v962_v1 = vld [vmem:[#allocation7 + $0x4] sm:$0xf]  ;;  %v922_v2 = vmov 0.0   ;;  %s923_s1 = smov 17   ;;  %v55_v45 = vlaneseq }
  0x11   :  { %84 = vrot.lane.b32.xlu0 %v922_v2, %s923_s1  ;;  %v75_v3 = vperm.slane %v960_v0, 2  ;;  %v77_v4 = vperm.slane %v962_v1, 2  ;;  %vm78_vm0 = vcmask 1041409   ;;  %v74_v5 = vperm.slane %v960_v0, 0  ;;  %s793_s2 = sld [smem:[#allocation2 + $0x1]]  ;;  %s924_s27 = smov 16  }
  0x12   :  { %v76_v6 = vperm.slane %v962_v1, 0  ;;  %s794_s26 = sld [smem:[#allocation2 + $0x13]]  ;;  %s925_s29 = smov 15   ;;  %v410_v33 = vperm.slane %v960_v0, 1  ;;  %v412_v34 = vperm.slane %v962_v1, 1  ;;  %v411_v35 = vperm.slane %v960_v0, 3 }
  0x13   :  { %v971_v7 = vsel %vm78_vm0, %v77_v4, %v75_v3  ;;  %s795_s28 = sld [smem:[#allocation2 + $0x25]]  ;;  %s926_s30 = smov 1   ;;  %v413_v36 = vperm.slane %v962_v1, 3  ;;  %vm129_vm1 = vcmask 130048   ;;  %v1062_v50 = vand.u32 127, %v55_v45 }
  0x14   :  { %88 = vrot.lane.b32.xlu1 %v971_v7, %s923_s1  ;;  %v976_v8 = vsel %vm78_vm0, %v76_v6, %v74_v5  ;;  %s927_s4 = smov 127   ;;  %s811_s5 = sld [smem:[#allocation2 + $0x7]]  ;;  %v1043_v37 = vsel %vm78_vm0, %v412_v34, %v410_v33  ;;  %vm90_vm2 = vcmask 138240   ;;  %vm182_vm5 = vcmask 121856  }
  0x15   :  { %s928_s6 = smov 113   ;;  %s812_s7 = sld [smem:[#allocation2 + $0x19]]  ;;  %v1048_v38 = vsel %vm78_vm0, %v413_v36, %v411_v35  ;;  %v1068_v52 = vadd.s32 128, %v1062_v50  ;;  %v58_v58 = vand.u32 15, %v1062_v50  ;;  %vm213_vm8 = vcmask 7168  }
  0x16   :  { %s929_s8 = smov 112   ;;  %s813_s9 = sld [smem:[#allocation2 + $0x2b]]  ;;  %vm262_vm9 = vcmask 1039360   ;;  %vm293_vm10 = vcmask 924672   ;;  %vm332_vm11 = vcmask 916480   ;;  %vm385_vm12 = vcmask 908288  }
  0x17   :  { %v116_v9 = vstv %s793_s2  ;;  %s930_s10 = smov 111   ;;  %s820_s11 = sld [smem:[#allocation2 + $0xa]]  ;;  %v59_v59 = vand.u32 15, %v1068_v52  ;;  %vm1080_vm3 = vcmp.ge.s32.totalorder %v58_v58, 1  ;;  %vm1151_vm6 = vcmp.le.s32.totalorder %v58_v58, 14 }
  0x18   :  { %v118_v10 = vmul.f32 %v116_v9, %v976_v8  ;;  %v117_v11 = vmul.f32 0.0, %v116_v9  ;;  %v137_v12 = vstv %s794_s26  ;;  %v119_v14 = vmul.f32 %v116_v9, %v971_v7  ;;  %s821_s12 = sld [smem:[#allocation2 + $0x1c]] }
  0x19   :  { %86 = vrot.lane.b32.xlu0 %v976_v8, %s923_s1  ;;  %v138_v13 = vmul.f32 0.0, %v137_v12  ;;  %v139_v15 = vmul.f32 %v137_v12, %v976_v8  ;;  %v157_v16 = vstv %s795_s28  ;;  %v140_v18 = vmul.f32 %v137_v12, %v971_v7  ;;  %s822_s13 = sld [smem:[#allocation2 + $0x2e]] }
  0x1a   :  { %125 = vrot.lane.b32.xlu2 %v118_v10, %s924_s27  ;;  %v158_v17 = vmul.f32 0.0, %v157_v16  ;;  %v159_v19 = vmul.f32 %v157_v16, %v976_v8  ;;  %v160_v20 = vmul.f32 %v157_v16, %v971_v7  ;;  %v319_v21 = vstv %s811_s5  ;;  %s97_s14 = sld [smem:[#allocation2]] }
  0x1b   :  { %v320_v22 = vmul.f32 %v319_v21, %v976_v8  ;;  %v321_v23 = vmul.f32 %v319_v21, %v971_v7  ;;  %v340_v24 = vstv %s812_s7  ;;  %v322_v26 = vmul.f32 0.0, %v319_v21  ;;  %s64_s15 = sld [smem:[#allocation5]] }
  0x1c   :  { %123 = vrot.lane.b32.xlu1 %v117_v11, %s924_s27  ;;  %v341_v25 = vmul.f32 %v340_v24, %v976_v8  ;;  %v342_v27 = vmul.f32 %v340_v24, %v971_v7  ;;  %v360_v28 = vstv %s813_s9  ;;  %v343_v30 = vmul.f32 0.0, %v340_v24  ;;  %s791_s16 = sld [smem:[#allocation2 + $0x12]] }
  0x1d   :  { %v361_v29 = vmul.f32 %v360_v28, %v976_v8  ;;  %v362_v31 = vmul.f32 %v360_v28, %v971_v7  ;;  %v363_v32 = vmul.f32 0.0, %v360_v28  ;;  %v447_v39 = vstv %s820_s11  ;;  %s1090_s17 = sld [smem:[#allocation5 + $0x1]] }
  0x1e   :  { %v449_v41 = vmul.f32 %v447_v39, %v1043_v37  ;;  %v448_v42 = vmul.f32 0.0, %v447_v39  ;;  %v450_v43 = vmul.f32 %v447_v39, %v1048_v38  ;;  %v467_v44 = vstv %s821_s12  ;;  %s792_s18 = sld [smem:[#allocation2 + $0x24]] }
  0x1f   :  { %v469_v48 = vmul.f32 %v467_v44, %v1043_v37  ;;  %v468_v49 = vmul.f32 0.0, %v467_v44  ;;  %v470_v51 = vmul.f32 %v467_v44, %v1048_v38  ;;  %v487_v54 = vstv %s822_s13  ;;  %s790_s19 = sld [smem:[#allocation5 + $0x2]] }
  0x20   :  { %v488_v57 = vmul.f32 0.0, %v487_v54  ;;  %vm1086_vm4 = vcmp.ge.s32.totalorder %v59_v59, 1  ;;  %v98_v62 = vstv %s97_s14  ;;  %v490_v6 = vmul.f32 %v487_v54, %v1048_v38  ;;  %s838_s20 = sld [smem:[#allocation2 + $0x10]] }
  0x21   :  { %144 = vrot.lane.b32.xlu0 %v138_v13, %s924_s27  ;;  %v65_v5 = vstv %s64_s15  ;;  %v489_v12 = vmul.f32 %v487_v54, %v1043_v37  ;;  %s1123_s21 = sld [smem:[#allocation2 + $0x2]]  ;;  %vm1157_vm7 = vcmp.le.s32.totalorder %v59_v59, 14  ;;  %vm1530_vm13 = vcmp.lt.s32.totalorder %v55_v45, 256 }
  0x22   :  { %127 = vrot.lane.b32.xlu2 %v119_v14, %s924_s27  ;;  %v104_v13 = vstv %s791_s16  ;;  %s839_s22 = sld [smem:[#allocation2 + $0x22]] }
  0x23   :  { %s1125_s23 = sld [smem:[#allocation2 + $0x14]] }
  0x24   :  { %146 = vrot.lane.b32.xlu1 %v139_v15, %s924_s27  ;;  %s1129_s24 = sld [smem:[#allocation2 + $0x26]] }
  0x25   :  { %v69_v35 = vstv %s790_s19  ;;  %s1137_s0 = sld [smem:[#allocation2 + $0x34]] }
  0x26   :  { %s1141_s25 = sld [smem:[#allocation2 + $0x3]] }
  0x27   :  { %s1164_s2 = sld [smem:[#allocation2 + $0x4]] }
  0x28   :  { %s1170_s26 = sld [smem:[#allocation2 + $0x27]] }
  0x29   :  { %164 = vrot.lane.b32.xlu0 %v158_v17, %s924_s27  ;;  %s1189_s28 = sld [smem:[#allocation2 + $0x28]] }
  0x2a   :  { %148 = vrot.lane.b32.xlu2 %v140_v18, %s924_s27  ;;  %v202_v52 = vstv %s1129_s24  ;;  %s1235_s5 = sld [smem:[#allocation2 + $0x6]] }
  0x2b   :  { %s1247_s7 = sld [smem:[#allocation2 + $0x2a]] }
  0x2c   :  { %166 = vrot.lane.b32.xlu1 %v159_v19, %s924_s27  ;;  %s1309_s9 = sld [smem:[#allocation2 + $0x1a]] }
  0x2d   :  { %s1315_s11 = sld [smem:[#allocation2 + $0x9]] }
  0x2e   :  { %s1317_s12 = sld [smem:[#allocation2 + $0x1b]] }
  0x2f   :  { %s1319_s13 = sld [smem:[#allocation2 + $0x2d]] }
  0x30   :  { %s1321_s14 = sld [smem:[#allocation2 + $0xb]] }
  0x31   :  { %176 = vrot.lane.b32.xlu0 %v922_v2, %s925_s29  ;;  %s1325_s15 = sld [smem:[#allocation2 + $0x1d]] }
  0x32   :  { %168 = vrot.lane.b32.xlu2 %v160_v20, %s924_s27  ;;  %s1327_s16 = sld [smem:[#allocation2 + $0x2f]] }
  0x33   :  { %s1338_s19 = sld [smem:[#allocation2 + $0x33]] }
  0x34   :  { %178 = vrot.lane.b32.xlu1 %v976_v8, %s925_s29  ;;  %s1378_s24 = sld [smem:[#allocation2 + $0xe]] }
  0x39   :  { %207 = vrot.lane.b32.xlu0 %v922_v2, %s926_s30 }
  0x3a   :  { %180 = vrot.lane.b32.xlu2 %v971_v7, %s925_s29 }
  0x3c   :  { %209 = vrot.lane.b32.xlu1 %v976_v8, %s926_s30 }
  0x41   :  { %256 = vrot.lane.b32.xlu0 %v976_v8, %s927_s4 }
  0x42   :  { %211 = vrot.lane.b32.xlu2 %v971_v7, %s926_s30 }
  0x44   :  { %258 = vrot.lane.b32.xlu1 %v971_v7, %s927_s4 }
  0x49   :  { %287 = vrot.lane.b32.xlu0 %v976_v8, %s928_s6 }
  0x4a   :  { %260 = vrot.lane.b32.xlu2 %v922_v2, %s927_s4 }
  0x4c   :  { %289 = vrot.lane.b32.xlu1 %v971_v7, %s928_s6 }
  0x51   :  { %326 = vrot.lane.b32.xlu0 %v320_v22, %s929_s8  ;;  %v67_v22 = vstv %s1090_s17  ;;  %s1332_s17 = sld [smem:[#allocation2 + $0xf]] }
  0x52   :  { %291 = vrot.lane.b32.xlu2 %v922_v2, %s928_s6 }
  0x54   :  { %328 = vrot.lane.b32.xlu1 %v321_v23, %s929_s8 }
  0x59   :  { %347 = vrot.lane.b32.xlu0 %v341_v25, %s929_s8 }
  0x5a   :  { %330 = vrot.lane.b32.xlu2 %v322_v26, %s929_s8 }
  0x5c   :  { %349 = vrot.lane.b32.xlu1 %v342_v27, %s929_s8  ;;  %v110_v27 = vstv %s792_s18  ;;  %s1336_s18 = sld [smem:[#allocation2 + $0x21]] }
  0x61   :  { %367 = vrot.lane.b32.xlu0 %v361_v29, %s929_s8 }
  0x62   :  { %351 = vrot.lane.b32.xlu2 %v343_v30, %s929_s8 }
  0x64   :  { %369 = vrot.lane.b32.xlu1 %v362_v31, %s929_s8 }
  0x69   :  { %379 = vrot.lane.b32.xlu0 %v976_v8, %s930_s10 }
  0x6a   :  { %371 = vrot.lane.b32.xlu2 %v363_v32, %s929_s8 }
  0x6c   :  { %381 = vrot.lane.b32.xlu1 %v971_v7, %s930_s10 }
  0x71   :  { %418 = vrot.lane.b32.xlu0 %v1043_v37, %s923_s1 }
  0x72   :  { %383 = vrot.lane.b32.xlu2 %v922_v2, %s930_s10 }
  0x74   :  { %v126_v40 = vpop.permute.xlu2 %125  ;;  %420 = vrot.lane.b32.xlu1 %v1048_v38, %s923_s1  ;;  %s1147_s1 = sld [smem:[#allocation2 + $0x15]] }
  0x79   :  { %456 = vrot.lane.b32.xlu0 %v449_v41, %s924_s27 }
  0x7a   :  { %454 = vrot.lane.b32.xlu2 %v448_v42, %s924_s27 }
  0x7c   :  { %v128_v46 = vpop.permute.xlu2 %127  ;;  %458 = vrot.lane.b32.xlu1 %v450_v43, %s924_s27 }
  0x7d   :  { %v131_v47 = vsel %vm129_vm1, %v126_v40, %v128_v46 }
  0x81   :  { %476 = vrot.lane.b32.xlu0 %v469_v48, %s924_s27 }
  0x82   :  { %474 = vrot.lane.b32.xlu2 %v468_v49, %s924_s27 }
  0x83   :  { %v1070_v53 = vpop.permute.xlu0 %84 }
  0x84   :  { %v149_v55 = vpop.permute.xlu2 %148  ;;  %478 = vrot.lane.b32.xlu1 %v470_v51, %s924_s27 }
  0x86   :  { %v89_v56 = vpop.permute.xlu1 %88 }
  0x89   :  { %506 = vrot.lane.b32.xlu0 %v1043_v37, %s925_s29 }
  0x8a   :  { %494 = vrot.lane.b32.xlu2 %v488_v57, %s924_s27  ;;  %v190_v57 = vstv %s1123_s21  ;;  %s1353_s21 = sld [smem:[#allocation2 + $0x1e]] }
  0x8b   :  { %v87_v63 = vpop.permute.xlu0 %86 }
  0x8c   :  { %v91_v0 = vsel %vm90_vm2, %v1070_v53, %v87_v63  ;;  %v92_v1 = vsel %vm90_vm2, %v87_v63, %v89_v56  ;;  %v169_v2 = vpop.permute.xlu2 %168  ;;  %508 = vrot.lane.b32.xlu1 %v1048_v38, %s925_s29  ;;  %v1162_v56 = vstv %s839_s22  ;;  %s1198_s29 = sld [smem:[#allocation2 + $0x5]] }
  0x8d   :  { %v95_v3 = vsel %vm1080_vm3, %v91_v0, 0.0  ;;  %v96_v4 = vsel %vm1086_vm4, %v92_v1, 0.0  ;;  %s1358_s22 = sld [smem:[#allocation2 + $0x30]] }
  0x8e   :  { %v99_v9 = vmul.f32 %v98_v62, %v95_v3  ;;  %v100_v10 = vmul.f32 %v98_v62, %v96_v4  ;;  %v124_v11 = vpop.permute.xlu1 %123  ;;  %v105_v17 = vmul.f32 %v104_v13, %v95_v3  ;;  %v106_v18 = vmul.f32 %v104_v13, %v96_v4 }
  0x8f   :  { %v130_v14 = vsel %vm129_vm1, %v124_v11, %v126_v40  ;;  %v111_v32 = vmul.f32 %v110_v27, %v95_v3  ;;  %v112_v33 = vmul.f32 %v110_v27, %v96_v4  ;;  %v196_v62 = vstv %s1125_s23  ;;  %s1372_s23 = sld [smem:[#allocation2 + $0xd]] }
  0x90   :  { %v101_v15 = vadd.f32 %v99_v9, %v65_v5  ;;  %v102_v16 = vadd.f32 %v100_v10, %v65_v5  ;;  %v107_v25 = vadd.f32 %v105_v17, %v67_v22  ;;  %v108_v26 = vadd.f32 %v106_v18, %v67_v22 }
  0x91   :  { %498 = vrot.lane.b32.xlu0 %v490_v6, %s924_s27  ;;  %v113_v40 = vadd.f32 %v111_v32, %v69_v35  ;;  %v114_v41 = vadd.f32 %v112_v33, %v69_v35  ;;  %v1187_v11 = vstv %s1137_s0  ;;  %v221_v22 = vstv %s1141_s25  ;;  %s1382_s0 = sld [smem:[#allocation2 + $0x1f]] }
  0x92   :  { %v1105_v19 = vadd.f32 %v130_v14, %v101_v15  ;;  %v1107_v20 = vadd.f32 %v131_v47, %v102_v16  ;;  %496 = vrot.lane.b32.xlu2 %v489_v12, %s924_s27  ;;  %v1135_v47 = vstv %s838_s20  ;;  %s1176_s27 = sld [smem:[#allocation2 + $0x16]] }
  0x93   :  { %v145_v21 = vpop.permute.xlu0 %144  ;;  %v639_v50 = vmul.f32 %v1135_v47, %v1048_v38  ;;  %s1346_s20 = sld [smem:[#allocation2 + $0xc]] }
  0x94   :  { %v181_v23 = vpop.permute.xlu2 %180  ;;  %534 = vrot.lane.b32.xlu1 %v1043_v37, %s926_s30  ;;  %s1386_s25 = sld [smem:[#allocation2 + $0x20]] }
  0x96   :  { %v147_v24 = vpop.permute.xlu1 %146 }
  0x97   :  { %v150_v28 = vsel %vm129_vm1, %v145_v21, %v147_v24  ;;  %v151_v29 = vsel %vm129_vm1, %v147_v24, %v149_v55  ;;  %v640_v55 = vmul.f32 0.0, %v1135_v47  ;;  %v233_v24 = vstv %s1170_s26  ;;  %s1448_s26 = sld [smem:[#allocation2 + $0x11]] }
  0x98   :  { %v154_v30 = vadd.f32 %v150_v28, %v107_v25  ;;  %v155_v31 = vadd.f32 %v151_v29, %v108_v26  ;;  %v660_v26 = vmul.f32 0.0, %v1162_v56  ;;  %v680_v29 = vmul.f32 0.0, %v1187_v11 }
  0x99   :  { %582 = vrot.lane.b32.xlu0 %v1048_v38, %s927_s4 }
  0x9a   :  { %536 = vrot.lane.b32.xlu2 %v1048_v38, %s926_s30  ;;  %s1202_s30 = sld [smem:[#allocation2 + $0x17]] }
  0x9b   :  { %v165_v34 = vpop.permute.xlu0 %164 }
  0x9c   :  { %v1119_v36 = vpop.permute.xlu2 %211  ;;  %580 = vrot.lane.b32.xlu1 %v1043_v37, %s927_s4  ;;  %s1209_s4 = sld [smem:[#allocation2 + $0x29]] }
  0x9e   :  { %v167_v39 = vpop.permute.xlu1 %166 }
  0x9f   :  { %v170_v42 = vsel %vm129_vm1, %v165_v34, %v167_v39  ;;  %v171_v43 = vsel %vm129_vm1, %v167_v39, %v169_v2  ;;  %v659_v2 = vmul.f32 %v1162_v56, %v1048_v38 }
  0xa0   :  { %v174_v44 = vadd.f32 %v170_v42, %v113_v40  ;;  %v175_v46 = vadd.f32 %v171_v43, %v114_v41  ;;  %v251_v43 = vstv %s1189_s28  ;;  %s1486_s28 = sld [smem:[#allocation2 + $0x23]] }
  0xa1   :  { %608 = vrot.lane.b32.xlu0 %v1043_v37, %s928_s6 }
  0xa2   :  { %610 = vrot.lane.b32.xlu2 %v1048_v38, %s928_s6  ;;  %s1240_s6 = sld [smem:[#allocation2 + $0x18]] }
  0xa3   :  { %v1139_v48 = vpop.permute.xlu0 %176 }
  0xa4   :  { %v1143_v49 = vpop.permute.xlu2 %260  ;;  %698 = vrot.lane.b32.xlu1 %v1048_v38, %s930_s10 }
  0xa6   :  { %v179_v63 = vpop.permute.xlu1 %178  ;;  %v713_v51 = vstv %s1486_s28 }
  0xa7   :  { %v183_v58 = vsel %vm182_vm5, %v1139_v48, %v179_v63  ;;  %v184_v59 = vsel %vm182_vm5, %v179_v63, %v181_v23  ;;  %v227_v23 = vstv %s1147_s1  ;;  %s1392_s1 = sld [smem:[#allocation2 + $0x32]] }
  0xa8   :  { %v187_v0 = vsel %vm1151_vm6, %v183_v58, 0.0  ;;  %v188_v1 = vsel %vm1157_vm7, %v184_v59, 0.0 }
  0xa9   :  { %v191_v3 = vmul.f32 %v190_v57, %v187_v0  ;;  %v192_v4 = vmul.f32 %v190_v57, %v188_v1  ;;  %v197_v5 = vmul.f32 %v196_v62, %v187_v0  ;;  %v198_v6 = vmul.f32 %v196_v62, %v188_v1  ;;  %648 = vrot.lane.b32.xlu0 %v640_v55, %s929_s8 }
  0xaa   :  { %v203_v9 = vmul.f32 %v202_v52, %v187_v0  ;;  %v204_v10 = vmul.f32 %v202_v52, %v188_v1  ;;  %646 = vrot.lane.b32.xlu2 %v639_v50, %s929_s8  ;;  %v270_v0 = vstv %s1198_s29  ;;  %v276_v1 = vstv %s1202_s30 }
  0xab   :  { %v193_v12 = vadd.f32 %v191_v3, %v1105_v19  ;;  %v194_v13 = vadd.f32 %v192_v4, %v1107_v20  ;;  %v199_v14 = vadd.f32 %v197_v5, %v154_v30  ;;  %v200_v15 = vadd.f32 %v198_v6, %v155_v31  ;;  %v1193_v16 = vpop.permute.xlu0 %207 }
  0xac   :  { %v205_v17 = vadd.f32 %v203_v9, %v174_v44  ;;  %v206_v18 = vadd.f32 %v204_v10, %v175_v46  ;;  %v1195_v21 = vpop.permute.xlu2 %291  ;;  %666 = vrot.lane.b32.xlu1 %v659_v2, %s929_s8  ;;  %v679_v19 = vmul.f32 %v1187_v11, %v1048_v38  ;;  %v239_v20 = vstv %s1164_s2  ;;  %s1405_s2 = sld [smem:[#allocation2 + $0x31]] }
  0xad   :  { %v245_v30 = vstv %s1176_s27  ;;  %v240_v33 = vmul.f32 %v239_v20, %v976_v8  ;;  %v241_v42 = vmul.f32 %v239_v20, %v971_v7  ;;  %v638_v2 = vmul.f32 %v1135_v47, %v1043_v37  ;;  %s1463_s27 = sld [smem:[#allocation2 + $0x35]] }
  0xae   :  { %v210_v25 = vpop.permute.xlu1 %209  ;;  %v246_v58 = vmul.f32 %v245_v30, %v976_v8  ;;  %v247_v59 = vmul.f32 %v245_v30, %v971_v7  ;;  %v282_v3 = vstv %s1209_s4  ;;  %v658_v5 = vmul.f32 %v1162_v56, %v1043_v37 }
  0xaf   :  { %v214_v27 = vsel %vm213_vm8, %v1193_v16, %v210_v25  ;;  %v215_v28 = vsel %vm213_vm8, %v210_v25, %v1119_v36  ;;  %v252_v6 = vmul.f32 %v251_v43, %v976_v8  ;;  %v253_v9 = vmul.f32 %v251_v43, %v971_v7 }
  0xb0   :  { %v218_v31 = vsel %vm1080_vm3, %v214_v27, 0.0  ;;  %v219_v32 = vsel %vm1086_vm4, %v215_v28, 0.0 }
  0xb1   :  { %v222_v34 = vmul.f32 %v221_v22, %v218_v31  ;;  %v223_v35 = vmul.f32 %v221_v22, %v219_v32  ;;  %v228_v39 = vmul.f32 %v227_v23, %v218_v31  ;;  %v229_v40 = vmul.f32 %v227_v23, %v219_v32  ;;  %686 = vrot.lane.b32.xlu0 %v679_v19, %s929_s8 }
  0xb2   :  { %v234_v36 = vmul.f32 %v233_v24, %v218_v31  ;;  %v235_v41 = vmul.f32 %v233_v24, %v219_v32  ;;  %668 = vrot.lane.b32.xlu2 %v660_v26, %s929_s8 }
  0xb3   :  { %v224_v44 = vadd.f32 %v222_v34, %v193_v12  ;;  %v225_v46 = vadd.f32 %v223_v35, %v194_v13  ;;  %v230_v55 = vadd.f32 %v228_v39, %v199_v14  ;;  %v231_v57 = vadd.f32 %v229_v40, %v200_v15  ;;  %v257_v62 = vpop.permute.xlu0 %256 }
  0xb4   :  { %v236_v63 = vadd.f32 %v234_v36, %v205_v17  ;;  %v237_v50 = vadd.f32 %v235_v41, %v206_v18  ;;  %v1226_v52 = vpop.permute.xlu2 %330  ;;  %688 = vrot.lane.b32.xlu1 %v680_v29, %s929_s8  ;;  %v307_v34 = vstv %s1240_s6  ;;  %v678_v39 = vmul.f32 %v1187_v11, %v1043_v37 }
  0xb5   :  { %v242_v47 = vadd.f32 %v240_v33, %v224_v44  ;;  %v243_v13 = vadd.f32 %v241_v42, %v225_v46  ;;  %v248_v15 = vadd.f32 %v246_v58, %v230_v55  ;;  %v249_v17 = vadd.f32 %v247_v59, %v231_v57 }
  0xb6   :  { %v259_v4 = vpop.permute.xlu1 %258  ;;  %v254_v23 = vadd.f32 %v252_v6, %v236_v63  ;;  %v255_v24 = vadd.f32 %v253_v9, %v237_v50  ;;  %v301_v33 = vstv %s1235_s5  ;;  %v313_v40 = vstv %s1247_s7 }
  0xb7   :  { %v263_v10 = vsel %vm262_vm9, %v257_v62, %v259_v4  ;;  %v264_v12 = vsel %vm262_vm9, %v259_v4, %v1143_v49 }
  0xb8   :  { %v267_v14 = vsel %vm1151_vm6, %v263_v10, 0.0  ;;  %v268_v56 = vsel %vm1157_vm7, %v264_v12, 0.0 }
  0xb9   :  { %v271_v8 = vmul.f32 %v270_v0, %v267_v14  ;;  %v272_v18 = vmul.f32 %v270_v0, %v268_v56  ;;  %v277_v7 = vmul.f32 %v276_v1, %v267_v14  ;;  %v278_v19 = vmul.f32 %v276_v1, %v268_v56  ;;  %644 = vrot.lane.b32.xlu0 %v638_v2, %s929_s8 }
  0xba   :  { %v283_v20 = vmul.f32 %v282_v3, %v267_v14  ;;  %v284_v22 = vmul.f32 %v282_v3, %v268_v56  ;;  %696 = vrot.lane.b32.xlu2 %v1043_v37, %s930_s10  ;;  %s1313_s10 = sld [smem:[#allocation2 + $0x2c]] }
  0xbb   :  { %v288_v25 = vpop.permute.xlu0 %287  ;;  %v273_v26 = vadd.f32 %v271_v8, %v242_v47  ;;  %v274_v27 = vadd.f32 %v272_v18, %v243_v13  ;;  %v279_v28 = vadd.f32 %v277_v7, %v248_v15  ;;  %v280_v29 = vadd.f32 %v278_v19, %v249_v17 }
  0xbc   :  { %v352_v30 = vpop.permute.xlu2 %351  ;;  %664 = vrot.lane.b32.xlu1 %v658_v5, %s929_s8  ;;  %v285_v31 = vadd.f32 %v283_v20, %v254_v23  ;;  %v286_v32 = vadd.f32 %v284_v22, %v255_v24 }
  0xbe   :  { %v290_v35 = vpop.permute.xlu1 %289 }
  0xbf   :  { %v294_v36 = vsel %vm293_vm10, %v288_v25, %v290_v35  ;;  %v295_v41 = vsel %vm293_vm10, %v290_v35, %v1195_v21 }
  0xc0   :  { %v298_v42 = vsel %vm1080_vm3, %v294_v36, 0.0  ;;  %v299_v43 = vsel %vm1086_vm4, %v295_v41, 0.0 }
  0xc1   :  { %v302_v44 = vmul.f32 %v301_v33, %v298_v42  ;;  %v303_v46 = vmul.f32 %v301_v33, %v299_v43  ;;  %v308_v55 = vmul.f32 %v307_v34, %v298_v42  ;;  %v309_v57 = vmul.f32 %v307_v34, %v299_v43 }
  0xc2   :  { %v314_v62 = vmul.f32 %v313_v40, %v298_v42  ;;  %v315_v63 = vmul.f32 %v313_v40, %v299_v43  ;;  %684 = vrot.lane.b32.xlu2 %v678_v39, %s929_s8  ;;  %s1307_s8 = sld [smem:[#allocation2 + $0x8]] }
  0xc3   :  { %v327_v11 = vpop.permute.xlu0 %326  ;;  %v304_v50 = vadd.f32 %v302_v44, %v273_v26  ;;  %v305_v58 = vadd.f32 %v303_v46, %v274_v27  ;;  %v310_v59 = vadd.f32 %v308_v55, %v279_v28  ;;  %v311_v0 = vadd.f32 %v309_v57, %v280_v29 }
  0xc4   :  { %v372_v1 = vpop.permute.xlu2 %371  ;;  %v316_v2 = vadd.f32 %v314_v62, %v285_v31  ;;  %v317_v3 = vadd.f32 %v315_v63, %v286_v32  ;;  %v399_v44 = vstv %s1309_s9  ;;  %v405_v55 = vstv %s1313_s10 }
  0xc6   :  { %v329_v4 = vpop.permute.xlu1 %328 }
  0xc7   :  { %v333_v5 = vsel %vm332_vm11, %v327_v11, %v329_v4  ;;  %v334_v6 = vsel %vm332_vm11, %v329_v4, %v1226_v52  ;;  %v429_v11 = vstv %s1315_s11  ;;  %v523_v4 = vstv %s1325_s15 }
  0xc8   :  { %v1273_v9 = vadd.f32 %v333_v5, %v304_v50  ;;  %v1275_v10 = vadd.f32 %v334_v6, %v305_v58  ;;  %v393_v42 = vstv %s1307_s8  ;;  %v435_v50 = vstv %s1317_s12 }
  0xc9   :  { %v529_v5 = vstv %s1327_s16  ;;  %v619_v6 = vstv %s1332_s17 }
  0xcb   :  { %v348_v12 = vpop.permute.xlu0 %347 }
  0xcc   :  { %v1277_v47 = vpop.permute.xlu2 %383 }
  0xce   :  { %v350_v13 = vpop.permute.xlu1 %349 }
  0xcf   :  { %v353_v14 = vsel %vm332_vm11, %v348_v12, %v350_v13  ;;  %v354_v56 = vsel %vm332_vm11, %v350_v13, %v352_v30 }
  0xd0   :  { %v1281_v15 = vadd.f32 %v353_v14, %v310_v59  ;;  %v1283_v17 = vadd.f32 %v354_v56, %v311_v0 }
  0xd3   :  { %v368_v8 = vpop.permute.xlu0 %367 }
  0xd4   :  { %v1285_v18 = vpop.permute.xlu2 %454 }
  0xd6   :  { %v370_v52 = vpop.permute.xlu1 %369 }
  0xd7   :  { %v373_v7 = vsel %vm332_vm11, %v368_v8, %v370_v52  ;;  %v374_v19 = vsel %vm332_vm11, %v370_v52, %v372_v1  ;;  %v441_v1 = vstv %s1319_s13  ;;  %v625_v8 = vstv %s1336_s18 }
  0xd8   :  { %v1289_v20 = vadd.f32 %v373_v7, %v316_v2  ;;  %v1291_v22 = vadd.f32 %v374_v19, %v317_v3  ;;  %v517_v2 = vstv %s1321_s14  ;;  %v631_v19 = vstv %s1338_s19 }
  0xdb   :  { %v380_v23 = vpop.permute.xlu0 %379 }
  0xdc   :  { %v1293_v24 = vpop.permute.xlu2 %474 }
  0xde   :  { %v382_v25 = vpop.permute.xlu1 %381 }
  0xdf   :  { %v386_v40 = vsel %vm385_vm12, %v380_v23, %v382_v25  ;;  %v387_v41 = vsel %vm385_vm12, %v382_v25, %v1277_v47 }
  0xe0   :  { %v390_v43 = vsel %vm1151_vm6, %v386_v40, 0.0  ;;  %v391_v46 = vsel %vm1157_vm7, %v387_v41, 0.0 }
  0xe1   :  { %v394_v63 = vmul.f32 %v393_v42, %v390_v43  ;;  %v395_v59 = vmul.f32 %v393_v42, %v391_v46  ;;  %v400_v0 = vmul.f32 %v399_v44, %v390_v43  ;;  %v401_v13 = vmul.f32 %v399_v44, %v391_v46 }
  0xe2   :  { %v406_v14 = vmul.f32 %v405_v55, %v390_v43  ;;  %v407_v52 = vmul.f32 %v405_v55, %v391_v46 }
  0xe3   :  { %v419_v26 = vpop.permute.xlu0 %418  ;;  %v396_v7 = vadd.f32 %v394_v63, %v1273_v9  ;;  %v402_v40 = vadd.f32 %v400_v0, %v1281_v15  ;;  %v551_v63 = vstv %s1353_s21 }
  0xe4   :  { %v1295_v27 = vpop.permute.xlu2 %494  ;;  %v422_v57 = vsel %vm90_vm2, %v1070_v53, %v419_v26  ;;  %v408_v44 = vadd.f32 %v406_v14, %v1289_v20  ;;  %v409_v55 = vadd.f32 %v407_v52, %v1291_v22 }
  0xe5   :  { %v426_v53 = vsel %vm1080_vm3, %v422_v57, 0.0  ;;  %v545_v57 = vstv %s1346_s20 }
  0xe6   :  { %v421_v28 = vpop.permute.xlu1 %420  ;;  %v430_v25 = vmul.f32 %v429_v11, %v426_v53  ;;  %v436_v41 = vmul.f32 %v435_v50, %v426_v53 }
  0xe7   :  { %v423_v58 = vsel %vm90_vm2, %v419_v26, %v421_v28  ;;  %v442_v26 = vmul.f32 %v441_v1, %v426_v53  ;;  %v397_v28 = vadd.f32 %v395_v59, %v1275_v10  ;;  %v403_v10 = vadd.f32 %v401_v13, %v1283_v17 }
  0xe8   :  { %v427_v56 = vsel %vm1086_vm4, %v423_v58, 0.0  ;;  %v438_v59 = vadd.f32 %v436_v41, %v402_v40  ;;  %v597_v41 = vstv %s1386_s25  ;;  %vm733_vm2 = vcmask 1040384  }
  0xe9   :  { %v431_v42 = vmul.f32 %v429_v11, %v427_v56  ;;  %v437_v9 = vmul.f32 %v435_v50, %v427_v56  ;;  %v432_v11 = vadd.f32 %v430_v25, %v396_v7  ;;  %v444_v50 = vadd.f32 %v442_v26, %v408_v44 }
  0xea   :  { %v591_v25 = vstv %s1378_s24 }
  0xeb   :  { %v1297_v29 = vpop.permute.xlu0 %456  ;;  %v433_v58 = vadd.f32 %v431_v42, %v397_v28  ;;  %v439_v0 = vadd.f32 %v437_v9, %v403_v10  ;;  %v603_v42 = vstv %s1392_s1 }
  0xec   :  { %v1299_v30 = vpop.permute.xlu2 %496  ;;  %v460_v53 = vsel %vm129_vm1, %v1285_v18, %v1297_v29 }
  0xed   :  { %v500_v18 = vsel %vm129_vm1, %v1295_v27, %v1299_v30 }
  0xee   :  { %v1301_v31 = vpop.permute.xlu1 %458 }
  0xef   :  { %v461_v20 = vsel %vm129_vm1, %v1297_v29, %v1301_v31 }
  0xf0   :  { %v465_v52 = vadd.f32 %v461_v20, %v433_v58 }
  0xf3   :  { %v1303_v32 = vpop.permute.xlu0 %476 }
  0xf4   :  { %v1305_v33 = vpop.permute.xlu2 %536 }
  0xf6   :  { %v1311_v34 = vpop.permute.xlu1 %478 }
  0xf7   :  { %v481_v7 = vsel %vm129_vm1, %v1303_v32, %v1311_v34 }
  0xf8   :  { %v485_v27 = vadd.f32 %v481_v7, %v439_v0 }
  0xfb   :  { %v1323_v35 = vpop.permute.xlu0 %506 }
  0xfc   :  { %v1329_v39 = vpop.permute.xlu2 %610  ;;  %v510_v31 = vsel %vm182_vm5, %v1139_v48, %v1323_v35 }
  0xfd   :  { %v514_v34 = vsel %vm1151_vm6, %v510_v31, 0.0  ;;  %v613_v31 = vsel %vm293_vm10, %v1329_v39, %v1195_v21 }
  0xfe   :  { %v509_v36 = vpop.permute.xlu1 %508  ;;  %v530_v44 = vmul.f32 %v529_v5, %v514_v34 }
  0xff   :  { %v511_v23 = vsel %vm182_vm5, %v1323_v35, %v509_v36  ;;  %v443_v36 = vmul.f32 %v441_v1, %v427_v56  ;;  %v563_v56 = vstv %s1372_s23  ;;  %v569_v35 = vstv %s1382_s0 }
 0x100   :  { %v515_v15 = vsel %vm1157_vm7, %v511_v23, 0.0  ;;  %v571_v10 = vmul.f32 %v569_v35, %v1048_v38  ;;  %v1468_v21 = vmul.f32 %v563_v56, %v1043_v37 }
 0x101   :  { %v519_v22 = vmul.f32 %v517_v2, %v515_v15  ;;  %v445_v13 = vadd.f32 %v443_v36, %v409_v55  ;;  %v525_v28 = vmul.f32 %v523_v4, %v515_v15  ;;  %v504_v36 = vadd.f32 %v500_v18, %v444_v50 }
 0x102   :  { %v531_v20 = vmul.f32 %v529_v5, %v515_v15  ;;  %v480_v50 = vsel %vm129_vm1, %v1293_v24, %v1303_v32  ;;  %v464_v15 = vadd.f32 %v460_v53, %v432_v11 }
 0x103   :  { %v1351_v62 = vpop.permute.xlu0 %498  ;;  %v521_v26 = vadd.f32 %v519_v22, %v465_v52  ;;  %v527_v55 = vadd.f32 %v525_v28, %v485_v27  ;;  %v575_v22 = vstv %s1405_s2  ;;  %v484_v53 = vadd.f32 %v480_v50, %v438_v59 }
 0x104   :  { %v1362_v3 = vpop.permute.xlu2 %646  ;;  %v501_v48 = vsel %vm129_vm1, %v1299_v30, %v1351_v62  ;;  %v565_v62 = vmul.f32 %v563_v56, %v1048_v38  ;;  %v577_v11 = vmul.f32 %v575_v22, %v1048_v38  ;;  %v570_v56 = vmul.f32 %v569_v35, %v1043_v37 }
 0x105   :  { %v518_v38 = vmul.f32 %v517_v2, %v514_v34  ;;  %v524_v59 = vmul.f32 %v523_v4, %v514_v34 }
 0x106   :  { %v535_v12 = vpop.permute.xlu1 %534 }
 0x107   :  { %v539_v43 = vsel %vm213_vm8, %v535_v12, %v1305_v33  ;;  %v557_v33 = vstv %s1358_s22  ;;  %v538_v29 = vsel %vm213_vm8, %v1193_v16, %v535_v12  ;;  %v505_v16 = vadd.f32 %v501_v48, %v445_v13 }
 0x108   :  { %v543_v17 = vsel %vm1086_vm4, %v539_v43, 0.0  ;;  %v542_v12 = vsel %vm1080_vm3, %v538_v29, 0.0 }
 0x109   :  { %v547_v23 = vmul.f32 %v545_v57, %v543_v17  ;;  %v553_v43 = vmul.f32 %v551_v63, %v543_v17  ;;  %v559_v58 = vmul.f32 %v557_v33, %v543_v17  ;;  %v558_v13 = vmul.f32 %v557_v33, %v542_v12 }
 0x10a   :  { %v533_v7 = vadd.f32 %v531_v20, %v505_v16  ;;  %v532_v17 = vadd.f32 %v530_v44, %v504_v36  ;;  %v526_v20 = vadd.f32 %v524_v59, %v484_v53 }
 0x10b   :  { %v583_v46 = vpop.permute.xlu0 %582  ;;  %v549_v9 = vadd.f32 %v547_v23, %v521_v26  ;;  %v555_v23 = vadd.f32 %v553_v43, %v527_v55  ;;  %v719_v43 = vstv %s1463_s27 }
 0x10c   :  { %v1413_v14 = vpop.permute.xlu2 %668  ;;  %v585_v40 = vsel %vm262_vm9, %v583_v46, %v1143_v49  ;;  %v560_v48 = vadd.f32 %v558_v13, %v532_v17 }
 0x10d   :  { %v589_v49 = vsel %vm1157_vm7, %v585_v40, 0.0  ;;  %v567_v5 = vadd.f32 %v565_v62, %v549_v9  ;;  %v573_v27 = vadd.f32 %v571_v10, %v555_v23  ;;  %v546_v9 = vmul.f32 %v545_v57, %v542_v12 }
 0x10e   :  { %v581_v1 = vpop.permute.xlu1 %580  ;;  %v593_v18 = vmul.f32 %v591_v25, %v589_v49  ;;  %v599_v26 = vmul.f32 %v597_v41, %v589_v49  ;;  %v605_v35 = vmul.f32 %v603_v42, %v589_v49  ;;  %v552_v49 = vmul.f32 %v551_v63, %v542_v12 }
 0x10f   :  { %v584_v52 = vsel %vm262_vm9, %v581_v1, %v583_v46  ;;  %v561_v46 = vadd.f32 %v559_v58, %v533_v7  ;;  %v576_v1 = vmul.f32 %v575_v22, %v1043_v37 }
 0x110   :  { %v588_v33 = vsel %vm1151_vm6, %v584_v52, 0.0  ;;  %v595_v40 = vadd.f32 %v593_v18, %v567_v5  ;;  %v554_v18 = vadd.f32 %v552_v49, %v526_v20 }
 0x111   :  { %v604_v61 = vmul.f32 %v603_v42, %v588_v33  ;;  %v579_v16 = vadd.f32 %v577_v11, %v561_v46  ;;  %v578_v34 = vadd.f32 %v576_v1, %v560_v48  ;;  %v601_v42 = vadd.f32 %v599_v26, %v573_v27 }
 0x112   :  { %v592_v5 = vmul.f32 %v591_v25, %v588_v33  ;;  %v598_v1 = vmul.f32 %v597_v41, %v588_v33 }
 0x113   :  { %v609_v30 = vpop.permute.xlu0 %608  ;;  %v606_v55 = vadd.f32 %v604_v61, %v578_v34  ;;  %v607_v50 = vadd.f32 %v605_v35, %v579_v16 }
 0x114   :  { %v612_v24 = vsel %vm293_vm10, %v609_v30, %v1329_v39  ;;  %v697_v32 = vpop.permute.xlu2 %696  ;;  %v617_v39 = vsel %vm1086_vm4, %v613_v31, 0.0  ;;  %v707_v30 = vstv %s1448_s26 }
 0x115   :  { %v616_v28 = vsel %vm1080_vm3, %v612_v24, 0.0  ;;  %v621_v37 = vmul.f32 %v619_v6, %v617_v39  ;;  %v627_v58 = vmul.f32 %v625_v8, %v617_v39  ;;  %v633_v13 = vmul.f32 %v631_v19, %v617_v39 }
 0x116   :  { %v699_v0 = vpop.permute.xlu1 %698  ;;  %v632_v2 = vmul.f32 %v631_v19, %v616_v28  ;;  %v620_v19 = vmul.f32 %v619_v6, %v616_v28  ;;  %v626_v27 = vmul.f32 %v625_v8, %v616_v28 }
 0x117   :  { %v701_v62 = vsel %vm385_vm12, %v699_v0, %v1277_v47  ;;  %v700_v36 = vsel %vm385_vm12, %v697_v32, %v699_v0  ;;  %v623_v44 = vadd.f32 %v621_v37, %v595_v40  ;;  %v520_v47 = vadd.f32 %v518_v38, %v464_v15 }
 0x118   :  { %v705_v10 = vsel %vm1157_vm7, %v701_v62, 0.0  ;;  %v704_v31 = vsel %vm1151_vm6, %v700_v36, 0.0  ;;  %v634_v12 = vadd.f32 %v632_v2, %v606_v55  ;;  %v629_v7 = vadd.f32 %v627_v58, %v601_v42 }
 0x119   :  { %v548_v0 = vadd.f32 %v546_v9, %v520_v47  ;;  %v709_v52 = vmul.f32 %v707_v30, %v705_v10  ;;  %v720_v17 = vmul.f32 %v719_v43, %v704_v31  ;;  %v635_v46 = vadd.f32 %v633_v13, %v607_v50 }
 0x11a   :  { %v715_v39 = vmul.f32 %v713_v51, %v705_v10  ;;  %v721_v48 = vmul.f32 %v719_v43, %v705_v10  ;;  %v572_v40 = vadd.f32 %v570_v56, %v554_v18  ;;  %v708_v8 = vmul.f32 %v707_v30, %v704_v31 }
 0x11b   :  { %v649_v29 = vpop.permute.xlu0 %648  ;;  %v566_v53 = vadd.f32 %v1468_v21, %v548_v0  ;;  %v714_v36 = vmul.f32 %v713_v51, %v704_v31 }
 0x11c   :  { %v651_v4 = vsel %vm332_vm11, %v1362_v3, %v649_v29  ;;  %v685_v57 = vpop.permute.xlu2 %684  ;;  %v600_v33 = vadd.f32 %v598_v1, %v572_v40 }
 0x11d   :  { %v655_v22 = vadd.f32 %v651_v4, %v623_v44  ;;  %v594_v26 = vadd.f32 %v592_v5, %v566_v53 }
 0x11e   :  { %v1492_v60 = vpop.permute.xlu1 %666  ;;  %v628_v2 = vadd.f32 %v626_v27, %v600_v33 }
 0x11f   :  { %v671_v63 = vsel %vm332_vm11, %v1492_v60, %v1413_v14  ;;  %v711_v24 = vadd.f32 %v709_v52, %v655_v22  ;;  %v622_v21 = vadd.f32 %v620_v19, %v594_v26 }
 0x120   :  { %v675_v14 = vadd.f32 %v671_v63, %v629_v7 }
 0x121   :  { %v727_v38 = vmul.f32 0.01, %v711_v24  ;;  %vm725_vm14 = vcmp.ge.f32.partialorder %v711_v24, 0.0 }
 0x122   :  { %v717_v59 = vadd.f32 %v715_v39, %v675_v14 }
 0x123   :  { %v687_v54 = vpop.permute.xlu0 %686  ;;  %v729_v62 = vsel %vm725_vm14, %v711_v24, %v727_v38 }
 0x124   :  { %v690_v23 = vsel %vm332_vm11, %v685_v57, %v687_v54  ;;  %v749_v45 = vmul.f32 0.01, %v717_v59  ;;  %vm747_vm3 = vcmp.ge.f32.partialorder %v717_v59, 0.0  ;;  %v732_v49 = vrot.slane %v729_v62, 7 }
 0x125   :  { %v694_v15 = vadd.f32 %v690_v23, %v634_v12 }
 0x126   :  { %v689_v32 = vpop.permute.xlu1 %688  ;;  %v751_v10 = vsel %vm747_vm3, %v717_v59, %v749_v45 }
 0x127   :  { %v691_v11 = vsel %vm332_vm11, %v687_v54, %v689_v32  ;;  %v722_v29 = vadd.f32 %v720_v17, %v694_v15  ;;  %v754_v50 = vrot.slane %v751_v10, 7 }
 0x128   :  { %v695_v25 = vadd.f32 %v691_v11, %v635_v46 }
 0x129   :  { %v766_v37 = vmul.f32 0.01, %v722_v29  ;;  %vm764_vm1 = vcmp.ge.f32.partialorder %v722_v29, 0.0 }
 0x12a   :  { %v723_v61 = vadd.f32 %v721_v48, %v695_v25 }
 0x12b   :  { %v645_v6 = vpop.permute.xlu0 %644  ;;  %v768_v44 = vsel %vm764_vm1, %v722_v29, %v766_v37 }
 0x12c   :  { %vm765_vm15 = vcmp.ge.f32.partialorder %v723_v61, 0.0  ;;  %v767_v35 = vmul.f32 0.01, %v723_v61  ;;  %v650_v56 = vsel %vm332_vm11, %v645_v6, %v1362_v3 }
 0x12d   :  { %v654_v28 = vadd.f32 %v650_v56, %v622_v21 }
 0x12e   :  { %v769_v16 = vsel %vm765_vm15, %v723_v61, %v767_v35  ;;  %v665_v9 = vpop.permute.xlu1 %664 }
 0x12f   :  { %v772_v4 = vrot.slane %v769_v16, 7  ;;  %v710_v34 = vadd.f32 %v708_v8, %v654_v28  ;;  %v670_v43 = vsel %vm332_vm11, %v665_v9, %v1492_v60 }
 0x130   :  { %v674_v42 = vadd.f32 %v670_v43, %v628_v2 }
 0x131   :  { %v774_v3 = vsel %vm78_vm0, %v768_v44, %v772_v4  ;;  %vm724_vm4 = vcmp.ge.f32.partialorder %v710_v34, 0.0  ;;  %v726_v30 = vmul.f32 0.01, %v710_v34  ;;  %v773_v47 = vsel %vm733_vm2, %v768_v44, %v772_v4 }
 0x132   :  { %v775_v57 = vrot.slane %v774_v3, 1  ;;  %847 = vst.msk [vmem:[%s1579_s3 + $0x2] ss:$4 sm:$0x3] %vm1530_vm13, %v773_v47  ;;  %v716_v55 = vadd.f32 %v714_v36, %v674_v42 }
 0x133   :  { %v728_v60 = vsel %vm724_vm4, %v710_v34, %v726_v30 }
 0x134   :  { %848 = vst.msk [vmem:[%s1579_s3 + $0xa] ss:$4 sm:$0x3] %vm1530_vm13, %v775_v57  ;;  %v734_v20 = vsel %vm733_vm2, %v728_v60, %v732_v49  ;;  %v735_v58 = vsel %vm78_vm0, %v728_v60, %v732_v49  ;;  %vm746_vm5 = vcmp.ge.f32.partialorder %v716_v55, 0.0  ;;  %v748_v22 = vmul.f32 0.01, %v716_v55 }
 0x135   :  { %v736_v0 = vrot.slane %v735_v58, 1  ;;  %743 = vst.msk [vmem:[%s1579_s3] ss:$4 sm:$0x3] %vm1530_vm13, %v734_v20 }
 0x136   :  { %v750_v31 = vsel %vm746_vm5, %v716_v55, %v748_v22 }
 0x137   :  { %844 = vst.msk [vmem:[%s1579_s3 + $0x8] ss:$4 sm:$0x3] %vm1530_vm13, %v736_v0  ;;  %v755_v63 = vsel %vm733_vm2, %v750_v31, %v754_v50  ;;  %v756_v54 = vsel %vm78_vm0, %v750_v31, %v754_v50 }
 0x138   :  { %v757_v12 = vrot.slane %v756_v54, 1  ;;  %845 = vst.msk [vmem:[%s1579_s3 + $0x1] ss:$4 sm:$0x3] %vm1530_vm13, %v755_v63 }
 0x13a   :  { %846 = vst.msk [vmem:[%s1579_s3 + $0x9] ss:$4 sm:$0x3] %vm1530_vm13, %v757_v12 }
 0x13b   :  { %786 = vsyncpa [#allocation3], 1 }
 0x13c   :  { %787 = vsyncpa [#allocation4], 1 }
 0x13d   :  { %788 = vsyncpa [#allocation6], 1 }

</bundles_post_ra>
